<compile_context>
chip_gen: v5e
topology: v5e:2x2
jax: 0.10.0
libtpu: 0.0.40
codegen_flags: <defaults>
</compile_context>

<pallas_src>
import jax
import jax.numpy as jnp
from jax.experimental import pallas as pl
from jax.experimental.pallas import tpu as pltpu


def _encoder_rnn_kernel(xa_ref, hc0_ref, we_ref, wg_ref, bg_ref, hc1_ref):
    # xa_ref:  (B, IN_PAD)   [x | 1 | 0...] — ones column carries b_phi
    # hc0_ref: (B, 2H)       packed [h0 | c0]
    # we_ref:  (IN_PAD, E)   W_phi^T with b_phi written into the ones row
    # wg_ref:  (E+H, 4H)     stacked [W_ih^T ; W_hh^T]
    # bg_ref:  (1, 4H)       b_ih + b_hh (broadcast in-kernel)
    # hc1_ref: (B, 2H)       packed [h1 | c1] output
    H = hc0_ref.shape[-1] // 2
    hc0 = hc0_ref[...]
    h0 = hc0[:, :H]
    c0 = hc0[:, H:]

    # embedder_phi (+ bias folded into the matmul) + ReLU (dropout = identity, eval)
    emb = jnp.maximum(
        jnp.dot(xa_ref[...], we_ref[...], preferred_element_type=jnp.float32),
        0.0)                                                        # (B, E)

    # Single fused gate matmul: [emb | h0] @ [W_ih^T ; W_hh^T]  + (b_ih + b_hh)
    xh = jnp.concatenate([emb, h0], axis=-1)                        # (B, E+H)
    gates = jnp.dot(xh, wg_ref[...],
                    preferred_element_type=jnp.float32) + bg_ref[...]   # (B, 4H)

    # Full-width nonlinearities on the 128-lane gates slab, then slice i,f,g,o
    # (PyTorch LSTM gate order). approx reciprocal ~1e-4 rel err: fine for a
    # single step; use exact reciprocal if unrolled over long sequences.
    sig = pl.reciprocal(1.0 + jnp.exp(-gates), approx=True)         # (B, 4H)
    tnh = jnp.tanh(gates)                                           # (B, 4H)
    i = sig[:, 0 * H:1 * H]
    f = sig[:, 1 * H:2 * H]
    g = tnh[:, 2 * H:3 * H]
    o = sig[:, 3 * H:4 * H]

    c1 = f * c0 + i * g
    h1 = o * jnp.tanh(c1)
    hc1_ref[...] = jnp.concatenate([h1, c1], axis=-1).astype(hc1_ref.dtype)


def prepare_encoder_params(p):
    """One-time parameter preparation. Call ONCE and reuse across steps."""
    E, IN = p["W_phi"].shape
    H = p["W_hh"].shape[1]
    # Pad the tiny contraction dim up to 8 sublanes; one extra column carries b_phi.
    IN_PAD = max(8, -(-(IN + 1) // 8) * 8)

    we = jnp.zeros((IN_PAD, E), jnp.float32)
    we = we.at[:IN, :].set(jnp.asarray(p["W_phi"], jnp.float32).T)
    we = we.at[IN, :].set(jnp.asarray(p["b_phi"], jnp.float32))      # bias row

    wg = jnp.concatenate([jnp.asarray(p["W_ih"], jnp.float32).T,
                          jnp.asarray(p["W_hh"], jnp.float32).T], axis=0)  # (E+H, 4H)
    bg = (jnp.asarray(p["b_ih"], jnp.float32)
          + jnp.asarray(p["b_hh"], jnp.float32))[None, :]            # (1, 4H)
    return {"we": we, "wg": wg, "bg": bg}


def encoder_rnn_forward(x, hidden, prepped):
    """EncoderRNN.forward.

    x:       (B, in_size) float32            (== input.view(-1, 2))
    hidden:  (h0, c0), each (1, B, hidden_size)
    prepped: output of prepare_encoder_params (constant across steps)
    returns (output, (h_n, c_n)) with output (B, 1, H), h_n/c_n (1, B, H).
    """
    h0, c0 = hidden
    B, IN = x.shape
    IN_PAD = prepped["we"].shape[0]
    H = prepped["wg"].shape[1] // 4

    # Per-call prep is tiny: augment x with the ones column (bias carrier) and
    # pack the state; both fuse away under jit.
    x_aug = jnp.concatenate(
        [x.astype(jnp.float32),
         jnp.ones((B, 1), jnp.float32),
         jnp.zeros((B, IN_PAD - IN - 1), jnp.float32)], axis=-1)      # (B, IN_PAD)
    hc0 = jnp.concatenate([h0.reshape(B, H), c0.reshape(B, H)], axis=-1)  # (B, 2H)

    vmem = pl.BlockSpec(memory_space=pltpu.MemorySpace.VMEM)
    hc1 = pl.pallas_call(
        _encoder_rnn_kernel,
        out_shape=jax.ShapeDtypeStruct((B, 2 * H), jnp.float32),
        in_specs=[vmem] * 5,
        out_specs=vmem,
    )(x_aug, hc0, prepped["we"], prepped["wg"], prepped["bg"])

    h1 = hc1[:, :H]
    c1 = hc1[:, H:]
    output = h1[:, None, :]                 # (B, 1, H): batch_first, seq_len = 1
    return output, (h1[None, :, :], c1[None, :, :])


def reference_forward(x, hidden, p):
    """Pure-JAX reference matching the PyTorch module semantics (eval mode)."""
    h0, c0 = hidden
    H = p["W_hh"].shape[1]
    emb = jax.nn.relu(x @ p["W_phi"].T + p["b_phi"])          # dropout = identity
    gates = emb @ p["W_ih"].T + p["b_ih"] + h0[0] @ p["W_hh"].T + p["b_hh"]
    i = jax.nn.sigmoid(gates[:, 0 * H:1 * H])
    f = jax.nn.sigmoid(gates[:, 1 * H:2 * H])
    g = jnp.tanh(gates[:, 2 * H:3 * H])
    o = jax.nn.sigmoid(gates[:, 3 * H:4 * H])
    c1 = f * c0[0] + i * g
    h1 = o * jnp.tanh(c1)
    return h1[:, None, :], (h1[None, :, :], c1[None, :, :])


if __name__ == "__main__":
    # args: in_size=2, embed_size=32, hidden_size=32, batch_size=8, 1 LSTM layer
    B, IN, E, H = 8, 2, 32, 32

    key = jax.random.PRNGKey(0)
    ks = jax.random.split(key, 10)
    x = jax.random.normal(ks[0], (B, IN), jnp.float32)
    # initHidden() returns zeros; use random state here to exercise the full cell.
    h0 = 0.5 * jax.random.normal(ks[1], (1, B, H), jnp.float32)
    c0 = 0.5 * jax.random.normal(ks[2], (1, B, H), jnp.float32)

    params = {
        "W_phi": 0.3 * jax.random.normal(ks[3], (E, IN), jnp.float32),
        "b_phi": 0.3 * jax.random.normal(ks[4], (E,), jnp.float32),
        "W_ih": 0.3 * jax.random.normal(ks[5], (4 * H, E), jnp.float32),
        "b_ih": 0.3 * jax.random.normal(ks[6], (4 * H,), jnp.float32),
        "W_hh": 0.3 * jax.random.normal(ks[7], (4 * H, H), jnp.float32),
        "b_hh": 0.3 * jax.random.normal(ks[8], (4 * H,), jnp.float32),
    }

    # One-time prep (hoisted out of the per-step path), then a jitted step.
    prepped = jax.block_until_ready(prepare_encoder_params(params))
    step = jax.jit(encoder_rnn_forward)

    out, (hn, cn) = step(x, (h0, c0), prepped)
    jax.block_until_ready((out, hn, cn))

    out_r, (hn_r, cn_r) = reference_forward(x, (h0, c0), params)

    assert out.shape == (B, 1, H) and hn.shape == (1, B, H) and cn.shape == (1, B, H)
    # approx-reciprocal sigmoid has ~1e-4 rel error -> slightly loosened tolerance
    assert bool(jnp.allclose(out, out_r, rtol=2e-3, atol=2e-3)), "output mismatch"
    assert bool(jnp.allclose(hn, hn_r, rtol=2e-3, atol=2e-3)), "h_n mismatch"
    assert bool(jnp.allclose(cn, cn_r, rtol=2e-3, atol=2e-3)), "c_n mismatch"

    print("KERNEL_OK")
</pallas_src>

<mosaic_0001>
module attributes {stable_mosaic.version = 11 : i64} {
  func.func @_encoder_rnn_kernel(%arg0: memref<8x8xf32, #tpu.memory_space<vmem>>, %arg1: memref<8x64xf32, #tpu.memory_space<vmem>>, %arg2: memref<8x32xf32, #tpu.memory_space<vmem>>, %arg3: memref<64x128xf32, #tpu.memory_space<vmem>>, %arg4: memref<1x128xf32, #tpu.memory_space<vmem>>, %arg5: memref<8x64xf32, #tpu.memory_space<vmem>>) attributes {dimension_semantics = [], scalar_prefetch = 0 : i64, scratch_operands = 0 : i64, tpu.core_type = #tpu.core_type<tc>} {
    %c0 = arith.constant 0 : index
    %c0_0 = arith.constant 0 : index
    %0 = vector.load %arg1[%c0, %c0_0] : memref<8x64xf32, #tpu.memory_space<vmem>>, vector<8x64xf32>
    %1 = vector.extract_strided_slice %0 {offsets = [0, 0], sizes = [8, 32], strides = [1, 1]} : vector<8x64xf32> to vector<8x32xf32>
    %2 = vector.extract_strided_slice %0 {offsets = [0, 32], sizes = [8, 32], strides = [1, 1]} : vector<8x64xf32> to vector<8x32xf32>
    %c0_1 = arith.constant 0 : index
    %c0_2 = arith.constant 0 : index
    %3 = vector.load %arg0[%c0_1, %c0_2] : memref<8x8xf32, #tpu.memory_space<vmem>>, vector<8x8xf32>
    %c0_3 = arith.constant 0 : index
    %c0_4 = arith.constant 0 : index
    %4 = vector.load %arg2[%c0_3, %c0_4] : memref<8x32xf32, #tpu.memory_space<vmem>>, vector<8x32xf32>
    %cst = arith.constant dense<0.000000e+00> : vector<8x32xf32>
    %5 = tpu.matmul %3, %4, %cst {dimension_numbers = #tpu.dot_dimension_numbers<[1], [0], [0], [1], [0, 0, 1, 1], [], []>} : vector<8x8xf32>, vector<8x32xf32>, vector<8x32xf32> -> vector<8x32xf32>
    %cst_5 = arith.constant 0.000000e+00 : f32
    %6 = vector.broadcast %cst_5 : f32 to vector<8x32xf32>
    %7 = arith.maximumf %5, %6 : vector<8x32xf32>
    %8 = tpu.concatenate %7, %1 in 1 : vector<8x32xf32>, vector<8x32xf32> -> vector<8x64xf32>
    %c0_6 = arith.constant 0 : index
    %c0_7 = arith.constant 0 : index
    %9 = vector.load %arg3[%c0_6, %c0_7] : memref<64x128xf32, #tpu.memory_space<vmem>>, vector<64x128xf32>
    %cst_8 = arith.constant dense<0.000000e+00> : vector<8x128xf32>
    %10 = tpu.matmul %8, %9, %cst_8 {dimension_numbers = #tpu.dot_dimension_numbers<[1], [0], [0], [1], [0, 0, 1, 1], [], []>} : vector<8x64xf32>, vector<64x128xf32>, vector<8x128xf32> -> vector<8x128xf32>
    %c0_9 = arith.constant 0 : index
    %c0_10 = arith.constant 0 : index
    %11 = vector.load %arg4[%c0_9, %c0_10] : memref<1x128xf32, #tpu.memory_space<vmem>>, vector<1x128xf32>
    %12 = vector.broadcast %11 : vector<1x128xf32> to vector<8x128xf32>
    %13 = arith.addf %10, %12 : vector<8x128xf32>
    %cst_11 = arith.constant 0.000000e+00 : f32
    %14 = vector.broadcast %cst_11 : f32 to vector<8x128xf32>
    %15 = arith.subf %14, %13 : vector<8x128xf32>
    %16 = math.exp %15 : vector<8x128xf32>
    %cst_12 = arith.constant 1.000000e+00 : f32
    %17 = vector.broadcast %cst_12 : f32 to vector<8x128xf32>
    %18 = arith.addf %17, %16 : vector<8x128xf32>
    %19 = tpu.reciprocal %18 {approx = true} : vector<8x128xf32> -> vector<8x128xf32>
    %20 = math.tanh %13 : vector<8x128xf32>
    %21 = vector.extract_strided_slice %19 {offsets = [0, 0], sizes = [8, 32], strides = [1, 1]} : vector<8x128xf32> to vector<8x32xf32>
    %22 = vector.extract_strided_slice %19 {offsets = [0, 32], sizes = [8, 32], strides = [1, 1]} : vector<8x128xf32> to vector<8x32xf32>
    %23 = vector.extract_strided_slice %20 {offsets = [0, 64], sizes = [8, 32], strides = [1, 1]} : vector<8x128xf32> to vector<8x32xf32>
    %24 = vector.extract_strided_slice %19 {offsets = [0, 96], sizes = [8, 32], strides = [1, 1]} : vector<8x128xf32> to vector<8x32xf32>
    %25 = arith.mulf %22, %2 : vector<8x32xf32>
    %26 = arith.mulf %21, %23 : vector<8x32xf32>
    %27 = arith.addf %25, %26 : vector<8x32xf32>
    %28 = math.tanh %27 : vector<8x32xf32>
    %29 = arith.mulf %24, %28 : vector<8x32xf32>
    %30 = tpu.concatenate %29, %27 in 1 : vector<8x32xf32>, vector<8x32xf32> -> vector<8x64xf32>
    %c0_13 = arith.constant 0 : index
    %c0_14 = arith.constant 0 : index
    %31 = vector.load %arg5[%c0_13, %c0_14] : memref<8x64xf32, #tpu.memory_space<vmem>>, vector<8x64xf32>
    tpu.vector_store %arg5[%c0_13, %c0_14], %30 {strides = array<i32>} : memref<8x64xf32, #tpu.memory_space<vmem>>, vector<8x64xf32>,
    return
  }
}

</mosaic_0001>

<bundles_post_ra>
// kernel: encoder_rnn_forward.1
= control target key start
LH: loop header
LB: loop body
LE: loop exit
PB: predicated region body
PF: predicated region fallthrough
CT: control target
= control target key end

     0   :  { %10 = vsyncpa [#allocation3], 0  ;;  %s182_s21 = smov [#allocation2]   ;;  %s183_s23 = smov 128   ;;  %s242_s0 = inlined_call_operand.vmem [shape: f32[8,8], index: 0, kind: input, shape index: {}]   ;;  %s243_s1 = inlined_call_operand.vmem [shape: f32[8,64], index: 1, kind: input, shape index: {}]   ;;  %s244_s2 = inlined_call_operand.vmem [shape: f32[8,32], index: 2, kind: input, shape index: {}]   ;;  %s245_s3 = inlined_call_operand.hbm [shape: f32[64,128], index: 3, kind: input, shape index: {}]   ;;  %s246_s4 = inlined_call_operand.vmem [shape: f32[1,128], index: 4, kind: input, shape index: {}]   ;;  %s247_s5 = inlined_call_operand.vmem [shape: f32[8,64], index: 5, kind: output, shape index: {}]  }
   0x1   :  { %s21_s20 = sshll.u32 %s245_s3, 4  ;;  %s23_s22 = sshll.u32 %s182_s21, 4  ;;  %s22_s20 = int_to_ptr.hbm [resolvable:$true] %s21_s20  ;;  %s24_s22 = int_to_ptr.vmem [resolvable:$true] %s23_s22 }
   0x2   :  { %s184_s24 = smov 8  }
   0x3   :  { %29 = dma.hbm_to_vmem [thread:$0]  %s22_s20, 1024, %s24_s22, [#allocation3], %s183_s23, %s183_s23, %s184_s24  }
   0x4   :  { %180 = dma.done.wait [#allocation3], 1024  }
   0x5   :  { %181 = vsyncadd [#allocation3], 4294966272  ;;  %vm39_vm0 = vcmask 64512   ;;  %v38_v0 = vld [vmem:[%s244_s2] sm:$0xff]  ;;  %s185_s30 = smov 32   ;;  %v77_v3 = vld [vmem:[#allocation2 + $0x38] sm:$0xff] }
   0x6   :  { %v37_v1 = vld [vmem:[%s242_s0] sm:$0xff]  ;;  %58 = vmatpush.msra.mxu0 %v38_v0  ;;  %v76_v4 = vld [vmem:[#allocation2 + $0x30] sm:$0xff]  ;;  %94 = vmatpush.msra.mxu1 %v77_v3  ;;  %v75_v5 = vld [vmem:[#allocation2 + $0x28] sm:$0xff]  ;;  %vm68_vm1 = vcmask 261120   ;;  %vm82_vm2 = vcmask 523264   ;;  %s186_s2 = smov 64  }
   0x7   :  { %v36_v2 = vld [vmem:[%s243_s1] sm:$0xff]  ;;  %140 = vmatmul.msk.f32.vlgmr.msra.gmra.mxu0 %vm39_vm0, %v37_v1  ;;  %v73_v7 = vld [vmem:[#allocation2 + $0x18] sm:$0xff]  ;;  %v72_v8 = vld [vmem:[#allocation2 + $0x10] sm:$0xff] }
   0x8   :  { %65 = vrot.lane.b32.xlu0 %v36_v2, %s185_s30  ;;  %95 = vmatpush.msra.mxu1 %v76_v4  ;;  %v74_v6 = vld [vmem:[#allocation2 + $0x20] sm:$0xff]  ;;  %v71_v9 = vld [vmem:[#allocation2 + $0x8] sm:$0xff] }
   0x9   :  { %v70_v10 = vld [vmem:[#allocation2] sm:$0xff] }
   0xa   :  { %96 = vmatpush.msra.mxu1 %v75_v5  ;;  %v147_v15 = vld [vmem:[%s246_s4] ss:$0 sm:$0xff] }
   0xc   :  { %97 = vmatpush.msra.mxu1 %v74_v6 }
   0xe   :  { %98 = vmatpush.msra.mxu1 %v73_v7 }
  0x10   :  { %99 = vmatpush.msra.mxu1 %v72_v8 }
  0x12   :  { %100 = vmatpush.msra.mxu1 %v71_v9 }
  0x14   :  { %101 = vmatpush.msra.mxu1 %v70_v10 }
  0x7a   :  { %v66_v12 = vpop.permute.xlu0 %65 }
  0x84   :  { %v60_v11 = vpop.f32.mrf.mxu0 }
  0x85   :  { %v63_v13 = vmax.f32 %v60_v11, 0.0 }
  0x87   :  { %v69_v14 = vsel %vm68_vm1, %v63_v13, %v66_v12 }
  0x88   :  { %141 = vmatmul.msk.f32.vlgmr.msra.gmra.mxu1 %vm82_vm2, %v69_v14 }
 0x105   :  { %v103_v16 = vpop.f32.mrf.mxu1 }
 0x106   :  { %v104_v17 = vadd.f32 %v147_v15, %v103_v16 }
 0x108   :  { %148 = vtanh.f32 %v104_v17  ;;  %v106_v19 = vsub.f32 0.0, %v104_v17 }
 0x10a   :  { %v107_v20 = vmul.f32 1.442695, %v106_v19 }
 0x10c   :  { %150 = vpow2.f32 %v107_v20 }
 0x10e   :  { %v149_v18 = vpop.eup %148 }
 0x10f   :  { %114 = vrot.lane.b32.xlu0 %v149_v18, %s186_s2 }
 0x112   :  { %v151_v21 = vpop.eup %150 }
 0x113   :  { %v109_v22 = vadd.f32 1.0, %v151_v21 }
 0x115   :  { %152 = vrcp.f32 %v109_v22 }
 0x11b   :  { %v153_v23 = vpop.eup %152 }
 0x11c   :  { %v112_v26 = vmul.f32 %v153_v23, %v36_v2 }
 0x181   :  { %v115_v24 = vpop.permute.xlu0 %114 }
 0x182   :  { %v117_v25 = vmul.f32 %v153_v23, %v115_v24 }
 0x184   :  { %119 = vrot.lane.b32.xlu1 %v117_v25, %s185_s30 }
 0x1f6   :  { %v120_v27 = vpop.permute.xlu1 %119 }
 0x1f7   :  { %v122_v28 = vadd.f32 %v120_v27, %v112_v26 }
 0x1f9   :  { %154 = vtanh.f32 %v122_v28 }
 0x1ff   :  { %v155_v29 = vpop.eup %154 }
 0x200   :  { %125 = vrot.lane.b32.xlu1 %v155_v29, %s186_s2 }
 0x272   :  { %v126_v30 = vpop.permute.xlu1 %125 }
 0x273   :  { %v128_v31 = vmul.f32 %v153_v23, %v126_v30 }
 0x275   :  { %130 = vrot.lane.b32.xlu2 %v128_v31, %s185_s30 }
 0x2cf   :  { %v131_v32 = vpop.permute.xlu2 %130 }
 0x2d0   :  { %v133_v33 = vsel %vm68_vm1, %v131_v32, %v122_v28 }
 0x2d1   :  { %134 = vst.msk [vmem:[%s247_s5] sm:$0xff] %vm82_vm2, %v133_v33 }
 0x2d2   :  { %139 = vsyncpa [#allocation3], 1 }

</bundles_post_ra>
